<compile_context>
chip_gen: v7x
topology: tpu7x:2x2x1
jax: 0.10.0
libtpu: 0.0.40
codegen_flags: <defaults>
</compile_context>

<pallas_src>
import jax
import jax.numpy as jnp
from jax.experimental import pallas as pl
from jax.experimental.pallas import tpu as pltpu


# --------------------------------------------------------------------------
# Kernel
# --------------------------------------------------------------------------
def blockup_kernel(x_ref, wb1_ref, s1_ref, t1_ref, wb2_ref, s2_ref, t2_ref,
                   wt_ref, bt_ref, out_ref, h1pad_ref):
    """One batch element per grid step.  Lane layout is (row, width*channels).

    x_ref    : (1, H, 3*W*2Cin) bf16  dy-pre-shifted, channel-concatenated rows
    wb1_ref  : (3*W*2Cin, W*Cout) bf16  conv1 band (dy + width padding folded in)
    s1/t1    : (1, W*Cout) f32          fused conv1-bias + BN scale / shift
    wb2_ref  : (3*W*Cout, W*Cout) bf16  conv2 band
    s2/t2    : (1, W*Cout) f32          fused conv2-bias + BN scale / shift
    wt_ref   : (W*Cout, 4*W*Cout) bf16  ConvTranspose band (both row parities)
    bt_ref   : (1, 4*W*Cout) f32        ConvTranspose bias (tiled)
    out_ref  : (1, H, 4*W*Cout) f32     out[0, i, dy*2WC + j*2Cout + dx*Cout + co]
    h1pad_ref: (H+2, W*Cout) f32        VMEM scratch for conv2 height halo
    """
    H = x_ref.shape[1]
    WC = wb2_ref.shape[1]                      # W * Cout  (activation lane width)

    # ---- Conv1 (3x3, pad=1) + fused BN + ReLU: a single K=3*W*2Cin dot ----
    acc1 = jnp.dot(x_ref[0], wb1_ref[...], preferred_element_type=jnp.float32)
    h1 = jnp.maximum(acc1 * s1_ref[...] + t1_ref[...], 0.0)

    # Stage h1 into the height-padded scratch.  Only the two halo rows are
    # zeroed per step; the interior is fully overwritten (megacore-safe).
    h1pad_ref[0:1, :] = jnp.zeros((1, WC), jnp.float32)
    h1pad_ref[H + 1:H + 2, :] = jnp.zeros((1, WC), jnp.float32)
    h1pad_ref[1:1 + H, :] = h1                 # aligned full-lane store

    # ---- Conv2 (3x3, pad=1) + fused BN + ReLU: build the dy-shifted slab
    # (H, 3*WC) once (lane-dim concat of three aligned 128-lane slices) and do
    # a single K=3*WC dot.
    h1s = jnp.concatenate(
        [h1pad_ref[0:H, :], h1pad_ref[1:1 + H, :], h1pad_ref[2:2 + H, :]],
        axis=1).astype(jnp.bfloat16)
    acc2 = jnp.dot(h1s, wb2_ref[...], preferred_element_type=jnp.float32)
    h2 = jnp.maximum(acc2 * s2_ref[...] + t2_ref[...], 0.0).astype(jnp.bfloat16)

    # ---- ConvTranspose2d (k=2, s=2): both row parities in one block-diagonal
    # dot, producing one lane-dense (H, 4*WC) slab -> one unmasked store.
    o = jnp.dot(h2, wt_ref[...], preferred_element_type=jnp.float32) + bt_ref[...]
    out_ref[0] = o.astype(out_ref.dtype)


# --------------------------------------------------------------------------
# Wrapper-side weight preparation (done once)
# --------------------------------------------------------------------------
def conv_band(w_hwio, W):
    """w_hwio: (3, 3, Cin, Cout) conv kernel, (ky, kx, ci, co) order.
    Returns (3*W*Cin, W*Cout): ky taps stacked along K, width zero-padding
    absorbed (out-of-range kx taps zeroed).  Row index = ky*W*Cin + jin*Cin + ci,
    col index = jout*Cout + co."""
    KH, KW, Cin, Cout = w_hwio.shape
    jin = jnp.arange(W)[:, None]
    jout = jnp.arange(W)[None, :]
    kx = jin - jout + (KW // 2)
    valid = (kx >= 0) & (kx < KW)
    bands = []
    for ky in range(KH):
        blk = w_hwio[ky][jnp.clip(kx, 0, KW - 1)] * valid[:, :, None, None]
        bands.append(blk.transpose(0, 2, 1, 3).reshape(W * Cin, W * Cout))
    return jnp.concatenate(bands, axis=0)


def convt_band(wt_dy, W):
    """wt_dy: (2, Cin, Cout) ConvTranspose taps (dx, ci, co) for one output-row
    parity.  Returns (W*Cin, W*2*Cout) block-diagonal weight producing the
    interleaved lane-dense row: out_lane = jout*2*Cout + dx*Cout + co."""
    Kx, Cin, Cout = wt_dy.shape
    eye = jnp.eye(W, dtype=wt_dy.dtype)
    blk = (eye[:, None, :, None, None]
           * jnp.transpose(wt_dy, (1, 0, 2))[None, :, None, :, :])  # (jin,ci,jout,dx,co)
    return blk.reshape(W * Cin, W * Kx * Cout)


def fuse_bn(b, gamma, beta, mean, var, eps=1e-5):
    s = gamma / jnp.sqrt(var + eps)
    t = (b - mean) * s + beta
    return s.reshape(1, -1), t.reshape(1, -1)


def prepare_weights(p, W, eps=1e-5):
    """Fold conv-bias+BN into scale/shift and build lane-dense banded weights."""
    Cout = p["w1"].shape[3]

    s1, t1 = fuse_bn(p["b1"], p["g1"], p["be1"], p["m1"], p["v1"], eps)
    s2, t2 = fuse_bn(p["b2"], p["g2"], p["be2"], p["m2"], p["v2"], eps)

    wb1 = conv_band(p["w1"], W)                       # (3*W*2Cin, W*Cout)
    wb2 = conv_band(p["w2"], W)                       # (3*W*Cout, W*Cout)
    # NOTE: a real PyTorch ConvTranspose2d weight is (Cin, Cout, kH, kW); here
    # p["wt"] is already in (dy, dx, ci, co) layout (transpose when importing).
    wtb = jnp.concatenate([convt_band(p["wt"][dy], W) for dy in range(2)],
                          axis=1)                     # (W*Cout, 4*W*Cout)

    return dict(
        wb1=wb1.astype(jnp.bfloat16), wb2=wb2.astype(jnp.bfloat16),
        wtb=wtb.astype(jnp.bfloat16),
        s1=jnp.tile(s1, (1, W)), t1=jnp.tile(t1, (1, W)),
        s2=jnp.tile(s2, (1, W)), t2=jnp.tile(t2, (1, W)),
        bt=jnp.tile(p["bt"].reshape(1, Cout), (1, 2 * 2 * W)),
    )


# --------------------------------------------------------------------------
# Forward
# --------------------------------------------------------------------------
def blockup_forward(x1, x2, kw):
    """x1, x2: (N, Cin, H, W) f32 (NCHW).  Returns (N, Cout, 2H, 2W) f32."""
    N, Cin, H, W = x1.shape
    WC4 = kw["bt"].shape[1]                    # 4 * W * Cout
    Cout = WC4 // (4 * W)
    WC = W * Cout
    K1 = kw["wb1"].shape[0]                    # 3 * W * 2Cin

    # Channel-concat + row-major lanes + dy pre-shift (height halo), bf16:
    # xs[n, i, dy*W*2Cin + j*2Cin + c] = xcat[n, c, i+dy-1, j]  (0 out of range)
    x = jnp.concatenate([x1, x2], axis=1)                      # (N, 2Cin, H, W)
    x = jnp.transpose(x, (0, 2, 3, 1)).reshape(N, H, W * 2 * Cin)
    xpad = jnp.pad(x, ((0, 0), (1, 1), (0, 0)))
    xs = jnp.concatenate([xpad[:, dy:dy + H, :] for dy in range(3)], axis=2)
    xs = xs.astype(jnp.bfloat16)                               # (N, H, 3*W*2Cin)

    out = pl.pallas_call(
        blockup_kernel,
        out_shape=jax.ShapeDtypeStruct((N, H, WC4), jnp.float32),
        grid_spec=pltpu.PrefetchScalarGridSpec(
            num_scalar_prefetch=0,
            grid=(N,),
            in_specs=[
                pl.BlockSpec((1, H, K1), lambda n: (n, 0, 0)),    # xs
                pl.BlockSpec((K1, WC), lambda n: (0, 0)),         # wb1
                pl.BlockSpec((1, WC), lambda n: (0, 0)),          # s1
                pl.BlockSpec((1, WC), lambda n: (0, 0)),          # t1
                pl.BlockSpec((3 * WC, WC), lambda n: (0, 0)),     # wb2
                pl.BlockSpec((1, WC), lambda n: (0, 0)),          # s2
                pl.BlockSpec((1, WC), lambda n: (0, 0)),          # t2
                pl.BlockSpec((WC, WC4), lambda n: (0, 0)),        # wtb
                pl.BlockSpec((1, WC4), lambda n: (0, 0)),         # bt
            ],
            out_specs=pl.BlockSpec((1, H, WC4), lambda n: (n, 0, 0)),
            scratch_shapes=[pltpu.VMEM((H + 2, WC), jnp.float32)],
        ),
        compiler_params=pltpu.CompilerParams(
            dimension_semantics=("parallel",)),
    )(xs, kw["wb1"], kw["s1"], kw["t1"], kw["wb2"], kw["s2"], kw["t2"],
      kw["wtb"], kw["bt"])

    # (N, H, 4W*Cout): [n, i, (dy, j, dx, co)]  ->  NCHW (N, Cout, 2H, 2W).
    y = out.reshape(N, H, 2, W, 2, Cout)
    y = y.transpose(0, 5, 1, 2, 3, 4).reshape(N, Cout, 2 * H, 2 * W)
    return y


# --------------------------------------------------------------------------
# Deterministic synthetic parameters + pure-JAX reference
# --------------------------------------------------------------------------
def make_params(key, in_channels, out_channels):
    Cin2, Cout = 2 * in_channels, out_channels
    ks = jax.random.split(key, 14)
    n = lambda k, shape: jax.random.normal(k, shape, jnp.float32)
    return dict(
        w1=0.1 * n(ks[0], (3, 3, Cin2, Cout)), b1=0.1 * n(ks[1], (Cout,)),
        g1=1.0 + 0.1 * n(ks[2], (Cout,)), be1=0.1 * n(ks[3], (Cout,)),
        m1=0.1 * n(ks[4], (Cout,)), v1=0.5 + jnp.abs(n(ks[5], (Cout,))),
        w2=0.1 * n(ks[6], (3, 3, Cout, Cout)), b2=0.1 * n(ks[7], (Cout,)),
        g2=1.0 + 0.1 * n(ks[8], (Cout,)), be2=0.1 * n(ks[9], (Cout,)),
        m2=0.1 * n(ks[10], (Cout,)), v2=0.5 + jnp.abs(n(ks[11], (Cout,))),
        wt=0.1 * n(ks[12], (2, 2, Cout, Cout)), bt=0.1 * n(ks[13], (Cout,)),
    )


def ref_forward(x1, x2, p, eps=1e-5):
    x = jnp.concatenate([x1, x2], axis=1).transpose(0, 2, 3, 1)   # NHWC

    def block(h, w, b, g, be, m, v):
        h = jax.lax.conv_general_dilated(
            h, w, (1, 1), "SAME",
            dimension_numbers=("NHWC", "HWIO", "NHWC"),
            precision=jax.lax.Precision.HIGHEST) + b
        h = (h - m) / jnp.sqrt(v + eps) * g + be
        return jnp.maximum(h, 0.0)

    h = block(x, p["w1"], p["b1"], p["g1"], p["be1"], p["m1"], p["v1"])
    h = block(h, p["w2"], p["b2"], p["g2"], p["be2"], p["m2"], p["v2"])

    taps = jnp.einsum("nhwc,yxcd->nhwyxd", h, p["wt"],
                      precision=jax.lax.Precision.HIGHEST) + p["bt"]
    N, H, W = h.shape[0], h.shape[1], h.shape[2]
    Cout = p["wt"].shape[-1]
    y = taps.transpose(0, 1, 3, 2, 4, 5).reshape(N, 2 * H, 2 * W, Cout)
    return y.transpose(0, 3, 1, 2)


if __name__ == "__main__":
    N, Cin, H, W = 2, 4, 16, 16     # BlockUp(in_channels=4, out_channels=8)
    Cout = 8
    key = jax.random.PRNGKey(0)
    k1, k2, kp = jax.random.split(key, 3)
    x1 = jax.random.normal(k1, (N, Cin, H, W), jnp.float32)
    x2 = jax.random.normal(k2, (N, Cin, H, W), jnp.float32)

    p = make_params(kp, Cin, Cout)
    kw = prepare_weights(p, W)

    y = jax.jit(blockup_forward)(x1, x2, kw)
    y = jax.block_until_ready(y)
    assert y.shape == (N, Cout, 2 * H, 2 * W), y.shape

    y_ref = ref_forward(x1, x2, p)
    # bf16 MXU operands (f32 accumulation) -> slightly wider tolerance vs the
    # HIGHEST-precision f32 reference.
    if not jnp.allclose(y, y_ref, atol=2e-2, rtol=2e-2):
        raise AssertionError(
            f"mismatch vs reference, max abs err = {jnp.max(jnp.abs(y - y_ref))}")

    print("KERNEL_OK")
</pallas_src>

<mosaic_0001>
module attributes {stable_mosaic.version = 11 : i64} {
  func.func @blockup_kernel(%arg0: i32, %arg1: memref<1x16x384xbf16, #tpu.memory_space<vmem>>, %arg2: memref<384x128xbf16, #tpu.memory_space<vmem>>, %arg3: memref<1x128xf32, #tpu.memory_space<vmem>>, %arg4: memref<1x128xf32, #tpu.memory_space<vmem>>, %arg5: memref<384x128xbf16, #tpu.memory_space<vmem>>, %arg6: memref<1x128xf32, #tpu.memory_space<vmem>>, %arg7: memref<1x128xf32, #tpu.memory_space<vmem>>, %arg8: memref<128x512xbf16, #tpu.memory_space<vmem>>, %arg9: memref<1x512xf32, #tpu.memory_space<vmem>>, %arg10: memref<1x16x512xf32, #tpu.memory_space<vmem>>, %arg11: memref<18x128xf32, #tpu.memory_space<vmem>>) attributes {dimension_semantics = [#tpu.dimension_semantics<parallel>], iteration_bounds = array<i64: 2>, scalar_prefetch = 0 : i64, scratch_operands = 1 : i64, tpu.core_type = #tpu.core_type<tc>, window_params = [{transform_indices = @transform_0, window_bounds = array<i64: 1, 16, 384>}, {pipeline_mode = #tpu.pipeline_mode<synchronous>, transform_indices = @transform_1, window_bounds = array<i64: 384, 128>}, {pipeline_mode = #tpu.pipeline_mode<synchronous>, transform_indices = @transform_2, window_bounds = array<i64: 1, 128>}, {pipeline_mode = #tpu.pipeline_mode<synchronous>, transform_indices = @transform_3, window_bounds = array<i64: 1, 128>}, {pipeline_mode = #tpu.pipeline_mode<synchronous>, transform_indices = @transform_4, window_bounds = array<i64: 384, 128>}, {pipeline_mode = #tpu.pipeline_mode<synchronous>, transform_indices = @transform_5, window_bounds = array<i64: 1, 128>}, {pipeline_mode = #tpu.pipeline_mode<synchronous>, transform_indices = @transform_6, window_bounds = array<i64: 1, 128>}, {pipeline_mode = #tpu.pipeline_mode<synchronous>, transform_indices = @transform_7, window_bounds = array<i64: 128, 512>}, {pipeline_mode = #tpu.pipeline_mode<synchronous>, transform_indices = @transform_8, window_bounds = array<i64: 1, 512>}, {transform_indices = @transform_9, window_bounds = array<i64: 1, 16, 512>}]} {
    %c0 = arith.constant 0 : index
    %c0_0 = arith.constant 0 : index
    %c0_1 = arith.constant 0 : index
    %0 = vector.load %arg1[%c0, %c0_0, %c0_1] : memref<1x16x384xbf16, #tpu.memory_space<vmem>>, vector<1x16x384xbf16>
    %1 = vector.shape_cast %0 : vector<1x16x384xbf16> to vector<16x384xbf16>
    %c0_2 = arith.constant 0 : index
    %c0_3 = arith.constant 0 : index
    %2 = vector.load %arg2[%c0_2, %c0_3] : memref<384x128xbf16, #tpu.memory_space<vmem>>, vector<384x128xbf16>
    %cst = arith.constant dense<0.000000e+00> : vector<16x128xf32>
    %3 = tpu.matmul %1, %2, %cst {dimension_numbers = #tpu.dot_dimension_numbers<[1], [0], [0], [1], [0, 0, 1, 1], [], []>} : vector<16x384xbf16>, vector<384x128xbf16>, vector<16x128xf32> -> vector<16x128xf32>
    %c0_4 = arith.constant 0 : index
    %c0_5 = arith.constant 0 : index
    %4 = vector.load %arg3[%c0_4, %c0_5] : memref<1x128xf32, #tpu.memory_space<vmem>>, vector<1x128xf32>
    %5 = vector.broadcast %4 : vector<1x128xf32> to vector<16x128xf32>
    %6 = arith.mulf %3, %5 : vector<16x128xf32>
    %c0_6 = arith.constant 0 : index
    %c0_7 = arith.constant 0 : index
    %7 = vector.load %arg4[%c0_6, %c0_7] : memref<1x128xf32, #tpu.memory_space<vmem>>, vector<1x128xf32>
    %8 = vector.broadcast %7 : vector<1x128xf32> to vector<16x128xf32>
    %9 = arith.addf %6, %8 : vector<16x128xf32>
    %cst_8 = arith.constant 0.000000e+00 : f32
    %10 = vector.broadcast %cst_8 : f32 to vector<16x128xf32>
    %11 = arith.maximumf %9, %10 : vector<16x128xf32>
    %cst_9 = arith.constant 0.000000e+00 : f32
    %12 = vector.broadcast %cst_9 : f32 to vector<1x128xf32>
    %c0_10 = arith.constant 0 : index
    %c0_11 = arith.constant 0 : index
    %13 = vector.load %arg11[%c0_10, %c0_11] : memref<18x128xf32, #tpu.memory_space<vmem>>, vector<1x128xf32>
    tpu.vector_store %arg11[%c0_10, %c0_11], %12 {strides = array<i32>} : memref<18x128xf32, #tpu.memory_space<vmem>>, vector<1x128xf32>,
    %cst_12 = arith.constant 0.000000e+00 : f32
    %14 = vector.broadcast %cst_12 : f32 to vector<1x128xf32>
    %c17 = arith.constant 17 : index
    %c0_13 = arith.constant 0 : index
    %15 = vector.load %arg11[%c17, %c0_13] : memref<18x128xf32, #tpu.memory_space<vmem>>, vector<1x128xf32>
    tpu.vector_store %arg11[%c17, %c0_13], %14 {strides = array<i32>} : memref<18x128xf32, #tpu.memory_space<vmem>>, vector<1x128xf32>,
    %c1 = arith.constant 1 : index
    %c0_14 = arith.constant 0 : index
    %16 = vector.load %arg11[%c1, %c0_14] : memref<18x128xf32, #tpu.memory_space<vmem>>, vector<16x128xf32>
    tpu.vector_store %arg11[%c1, %c0_14], %11 {strides = array<i32>} : memref<18x128xf32, #tpu.memory_space<vmem>>, vector<16x128xf32>,
    %c0_15 = arith.constant 0 : index
    %c0_16 = arith.constant 0 : index
    %17 = vector.load %arg11[%c0_15, %c0_16] : memref<18x128xf32, #tpu.memory_space<vmem>>, vector<16x128xf32>
    %c1_17 = arith.constant 1 : index
    %c0_18 = arith.constant 0 : index
    %18 = vector.load %arg11[%c1_17, %c0_18] : memref<18x128xf32, #tpu.memory_space<vmem>>, vector<16x128xf32>
    %c2 = arith.constant 2 : index
    %c0_19 = arith.constant 0 : index
    %19 = vector.load %arg11[%c2, %c0_19] : memref<18x128xf32, #tpu.memory_space<vmem>>, vector<16x128xf32>
    %20 = tpu.concatenate %17, %18, %19 in 1 : vector<16x128xf32>, vector<16x128xf32>, vector<16x128xf32> -> vector<16x384xf32>
    %21 = arith.truncf %20 : vector<16x384xf32> to vector<16x384xbf16>
    %c0_20 = arith.constant 0 : index
    %c0_21 = arith.constant 0 : index
    %22 = vector.load %arg5[%c0_20, %c0_21] : memref<384x128xbf16, #tpu.memory_space<vmem>>, vector<384x128xbf16>
    %cst_22 = arith.constant dense<0.000000e+00> : vector<16x128xf32>
    %23 = tpu.matmul %21, %22, %cst_22 {dimension_numbers = #tpu.dot_dimension_numbers<[1], [0], [0], [1], [0, 0, 1, 1], [], []>} : vector<16x384xbf16>, vector<384x128xbf16>, vector<16x128xf32> -> vector<16x128xf32>
    %c0_23 = arith.constant 0 : index
    %c0_24 = arith.constant 0 : index
    %24 = vector.load %arg6[%c0_23, %c0_24] : memref<1x128xf32, #tpu.memory_space<vmem>>, vector<1x128xf32>
    %25 = vector.broadcast %24 : vector<1x128xf32> to vector<16x128xf32>
    %26 = arith.mulf %23, %25 : vector<16x128xf32>
    %c0_25 = arith.constant 0 : index
    %c0_26 = arith.constant 0 : index
    %27 = vector.load %arg7[%c0_25, %c0_26] : memref<1x128xf32, #tpu.memory_space<vmem>>, vector<1x128xf32>
    %28 = vector.broadcast %27 : vector<1x128xf32> to vector<16x128xf32>
    %29 = arith.addf %26, %28 : vector<16x128xf32>
    %cst_27 = arith.constant 0.000000e+00 : f32
    %30 = vector.broadcast %cst_27 : f32 to vector<16x128xf32>
    %31 = arith.maximumf %29, %30 : vector<16x128xf32>
    %32 = arith.truncf %31 : vector<16x128xf32> to vector<16x128xbf16>
    %c0_28 = arith.constant 0 : index
    %c0_29 = arith.constant 0 : index
    %33 = vector.load %arg8[%c0_28, %c0_29] : memref<128x512xbf16, #tpu.memory_space<vmem>>, vector<128x512xbf16>
    %cst_30 = arith.constant dense<0.000000e+00> : vector<16x512xf32>
    %34 = tpu.matmul %32, %33, %cst_30 {dimension_numbers = #tpu.dot_dimension_numbers<[1], [0], [0], [1], [0, 0, 1, 1], [], []>} : vector<16x128xbf16>, vector<128x512xbf16>, vector<16x512xf32> -> vector<16x512xf32>
    %c0_31 = arith.constant 0 : index
    %c0_32 = arith.constant 0 : index
    %35 = vector.load %arg9[%c0_31, %c0_32] : memref<1x512xf32, #tpu.memory_space<vmem>>, vector<1x512xf32>
    %36 = vector.broadcast %35 : vector<1x512xf32> to vector<16x512xf32>
    %37 = arith.addf %34, %36 : vector<16x512xf32>
    %c0_33 = arith.constant 0 : index
    %c0_34 = arith.constant 0 : index
    %c0_35 = arith.constant 0 : index
    %38 = vector.load %arg10[%c0_33, %c0_34, %c0_35] : memref<1x16x512xf32, #tpu.memory_space<vmem>>, vector<1x16x512xf32>
    %39 = vector.shape_cast %38 : vector<1x16x512xf32> to vector<16x512xf32>
    %40 = vector.shape_cast %37 : vector<16x512xf32> to vector<1x16x512xf32>
    tpu.vector_store %arg10[%c0_33, %c0_34, %c0_35], %40 {strides = array<i32>} : memref<1x16x512xf32, #tpu.memory_space<vmem>>, vector<1x16x512xf32>,
    return
  }
  func.func @transform_0(%arg0: i32) -> (i32, i32, i32) {
    %c0_i32 = arith.constant 0 : i32
    %c0_i32_0 = arith.constant 0 : i32
    %c0_i32_1 = arith.constant 0 : i32
    return %arg0, %c0_i32, %c0_i32_0 : i32, i32, i32
  }
  func.func @transform_1(%arg0: i32) -> (i32, i32) {
    %c0_i32 = arith.constant 0 : i32
    %c0_i32_0 = arith.constant 0 : i32
    %c0_i32_1 = arith.constant 0 : i32
    return %c0_i32, %c0_i32_0 : i32, i32
  }
  func.func @transform_2(%arg0: i32) -> (i32, i32) {
    %c0_i32 = arith.constant 0 : i32
    %c0_i32_0 = arith.constant 0 : i32
    %c0_i32_1 = arith.constant 0 : i32
    return %c0_i32, %c0_i32_0 : i32, i32
  }
  func.func @transform_3(%arg0: i32) -> (i32, i32) {
    %c0_i32 = arith.constant 0 : i32
    %c0_i32_0 = arith.constant 0 : i32
    %c0_i32_1 = arith.constant 0 : i32
    return %c0_i32, %c0_i32_0 : i32, i32
  }
  func.func @transform_4(%arg0: i32) -> (i32, i32) {
    %c0_i32 = arith.constant 0 : i32
    %c0_i32_0 = arith.constant 0 : i32
    %c0_i32_1 = arith.constant 0 : i32
    return %c0_i32, %c0_i32_0 : i32, i32
  }
  func.func @transform_5(%arg0: i32) -> (i32, i32) {
    %c0_i32 = arith.constant 0 : i32
    %c0_i32_0 = arith.constant 0 : i32
    %c0_i32_1 = arith.constant 0 : i32
    return %c0_i32, %c0_i32_0 : i32, i32
  }
  func.func @transform_6(%arg0: i32) -> (i32, i32) {
    %c0_i32 = arith.constant 0 : i32
    %c0_i32_0 = arith.constant 0 : i32
    %c0_i32_1 = arith.constant 0 : i32
    return %c0_i32, %c0_i32_0 : i32, i32
  }
  func.func @transform_7(%arg0: i32) -> (i32, i32) {
    %c0_i32 = arith.constant 0 : i32
    %c0_i32_0 = arith.constant 0 : i32
    %c0_i32_1 = arith.constant 0 : i32
    return %c0_i32, %c0_i32_0 : i32, i32
  }
  func.func @transform_8(%arg0: i32) -> (i32, i32) {
    %c0_i32 = arith.constant 0 : i32
    %c0_i32_0 = arith.constant 0 : i32
    %c0_i32_1 = arith.constant 0 : i32
    return %c0_i32, %c0_i32_0 : i32, i32
  }
  func.func @transform_9(%arg0: i32) -> (i32, i32, i32) {
    %c0_i32 = arith.constant 0 : i32
    %c0_i32_0 = arith.constant 0 : i32
    %c0_i32_1 = arith.constant 0 : i32
    return %arg0, %c0_i32, %c0_i32_0 : i32, i32, i32
  }
}

</mosaic_0001>

<bundles_post_ra>
// kernel: blockup_forward.1
= control target key start
LH: loop header
LB: loop body
LE: loop exit
PB: predicated region body
PF: predicated region fallthrough
CT: control target
= control target key end

     0   :  { %s1692_s30 = smov 0   ;;  %s1994_s0 = inlined_call_operand.vmem [shape: bf16[2,16,384], index: 0, kind: input, shape index: {}]   ;;  %s1995_s1 = inlined_call_operand.vmem [shape: bf16[384,128], index: 1, kind: input, shape index: {}]   ;;  %s1996_s2 = inlined_call_operand.vmem [shape: f32[1,128], index: 2, kind: input, shape index: {}]   ;;  %s1997_s3 = inlined_call_operand.vmem [shape: f32[1,128], index: 3, kind: input, shape index: {}]   ;;  %s1998_s4 = inlined_call_operand.vmem [shape: bf16[384,128], index: 4, kind: input, shape index: {}]   ;;  %s1999_s5 = inlined_call_operand.vmem [shape: f32[1,128], index: 5, kind: input, shape index: {}]   ;;  %s2000_s6 = inlined_call_operand.vmem [shape: f32[1,128], index: 6, kind: input, shape index: {}]   ;;  %s2001_s7 = inlined_call_operand.vmem [shape: bf16[128,512], index: 7, kind: input, shape index: {}]   ;;  %s2002_s8 = inlined_call_operand.vmem [shape: f32[1,512], index: 8, kind: input, shape index: {}]   ;;  %s2003_s9 = inlined_call_operand.vmem [shape: f32[2,16,512], index: 9, kind: output, shape index: {}]  }
   0x1 LB: > { %s1319_s10 = sadd.s32 4294967295, %s1637_s30   ;;  %p1323_p0 = scmp.ge.s32.totalorder %s1637_s30, 1  ;;  %s1637_s30 = sphi %s1692_s30, %s19_s30  }
   0x2   : > { %p287_p1 = scmp.lt.s32.totalorder %s1637_s30, 3 }
   0x4   : > { %p288_p2 = pnand %p1323_p0, %p287_p1 }
   0x5   : > { %v1531_v0 = vld [vmem:[%s1995_s1 + $0x40] sm:$0xff] (!%p288_p2)   ;;  %v1639_v1 = vmov (!%p288_p2), 0.0   ;;  %v1534_v4 = vld [vmem:[%s1995_s1 + $0x48] sm:$0xff] (!%p288_p2)   ;;  %vm1640_vm0 = vmmov (!%p288_p2), 0   ;;  %v1537_v7 = vld [vmem:[%s1995_s1 + $0x50] sm:$0xff] (!%p288_p2)   ;;  %p323_p3 = scmp.lt.s32.totalorder (!%p288_p2), %s1319_s10, 1 }
   0x6   : > { %291 = sbr.rel (%p288_p2) target bundleno = 719 (0x2cf), region = 56  ;;  %1479 = vmatprep.subr.bf16.mxu1 (!%p288_p2), %v1639_v1  ;;  %648 = vst [vmem:[#allocation2] sm:$0x1] (!%p288_p2), %v1639_v1  ;;  %649 = vst [vmem:[#allocation2 + $0x11] sm:$0x1] (!%p288_p2), %v1639_v1  ;;  %v1532_v2 = vld [vmem:[%s1995_s1] sm:$0xff] (!%p288_p2)   ;;  %1417 = vmatprep.subr.bf16.mxu0 (!%p288_p2), %v1531_v0 }
   0x7   : > { %v1533_v3 = vld [vmem:[%s1995_s1 + $0x80] sm:$0xff] (!%p288_p2)   ;;  %1418 = vmatpush3.bf16.msra.mxu0 (!%p288_p2), %v1532_v2  ;;  %1495 = vmatprep.mubr.msk.bf16.mxu1 (!%p288_p2), %vm1640_vm0, %v1639_v1  ;;  %v1535_v5 = vld [vmem:[%s1995_s1 + $0x8] sm:$0xff] (!%p288_p2)   ;;  %v1538_v8 = vld [vmem:[%s1995_s1 + $0x10] sm:$0xff] (!%p288_p2)  }
   0x8   : > { %1480 = vmatpush3.bf16.msra.mxu1 (!%p288_p2), %v1533_v3  ;;  %1419 = vmatprep.subr.bf16.mxu0 (!%p288_p2), %v1534_v4  ;;  %v1536_v6 = vld [vmem:[%s1995_s1 + $0x88] sm:$0xff] (!%p288_p2)   ;;  %v1539_v9 = vld [vmem:[%s1995_s1 + $0x90] sm:$0xff] (!%p288_p2)   ;;  %v1540_v10 = vld [vmem:[%s1995_s1 + $0x58] sm:$0xff] (!%p288_p2)  }
   0x9   : > { %1481 = vmatprep.subr.bf16.mxu1 (!%p288_p2), %v1639_v1  ;;  %v1541_v11 = vld [vmem:[%s1995_s1 + $0x18] sm:$0xff] (!%p288_p2)   ;;  %v1543_v13 = vld [vmem:[%s1995_s1 + $0x60] sm:$0xff] (!%p288_p2)   ;;  %v1546_v16 = vld [vmem:[%s1995_s1 + $0x68] sm:$0xff] (!%p288_p2)  }
   0xa   : > { %v1542_v12 = vld [vmem:[%s1995_s1 + $0x98] sm:$0xff] (!%p288_p2)   ;;  %v1544_v14 = vld [vmem:[%s1995_s1 + $0x20] sm:$0xff] (!%p288_p2)   ;;  %v1547_v17 = vld [vmem:[%s1995_s1 + $0x28] sm:$0xff] (!%p288_p2)  }
   0xb   : > { %1420 = vmatpush3.bf16.msra.mxu0 (!%p288_p2), %v1535_v5  ;;  %v1545_v15 = vld [vmem:[%s1995_s1 + $0xa0] sm:$0xff] (!%p288_p2)   ;;  %v1548_v18 = vld [vmem:[%s1995_s1 + $0xa8] sm:$0xff] (!%p288_p2)   ;;  %v1549_v19 = vld [vmem:[%s1995_s1 + $0x70] sm:$0xff] (!%p288_p2)  }
   0xc   : > { %1482 = vmatpush3.bf16.msra.mxu1 (!%p288_p2), %v1536_v6  ;;  %1421 = vmatprep.subr.bf16.mxu0 (!%p288_p2), %v1537_v7  ;;  %v1550_v20 = vld [vmem:[%s1995_s1 + $0x30] sm:$0xff] (!%p288_p2)   ;;  %v1552_v22 = vld [vmem:[%s1995_s1 + $0x78] sm:$0xff] (!%p288_p2)   ;;  %v1559_v27 = vld [vmem:[%s1998_s4 + $0x40] sm:$0xff] (!%p288_p2)  }
   0xd   : > { %1483 = vmatprep.subr.bf16.mxu1 %v1639_v1  ;;  %s2005_s10 = smov (!%p323_p3, %s1319_s10), 1  ;;  %v1551_v21 = vld [vmem:[%s1995_s1 + $0xb0] sm:$0xff]   ;;  %v1553_v24 = vld [vmem:[%s1995_s1 + $0x38] sm:$0xff]   ;;  %v1560_v29 = vld [vmem:[%s1998_s4 + $0x80] sm:$0xff]  }
   0xe   : > { %s1519_s26 = smul.u32 24, %s2005_s10  ;;  %v1554_v25 = vld [vmem:[%s1995_s1 + $0xb8] sm:$0xff]   ;;  %v1561_v30 = vld [vmem:[%s1998_s4] sm:$0xff]   ;;  %v1562_v31 = vld [vmem:[%s1998_s4 + $0x48] sm:$0xff]   ;;  %s1416_s14 = sshll.u32 %s2005_s10, 6 }
   0xf   : > { %1422 = vmatpush3.bf16.msra.mxu0 %v1538_v8  ;;  %v1564_v32 = vld [vmem:[%s1998_s4 + $0x8] sm:$0xff]   ;;  %v1565_v34 = vld [vmem:[%s1998_s4 + $0x50] sm:$0xff]   ;;  %v1568_v37 = vld [vmem:[%s1998_s4 + $0x58] sm:$0xff]   ;;  %s332_s17 = scalar_lea.vmem %s2003_s9, %s1416_s14 }
  0x10   : > { %1484 = vmatpush3.bf16.msra.mxu1 %v1539_v9  ;;  %1423 = vmatprep.subr.bf16.mxu0 %v1540_v10  ;;  %s327_s16 = scalar_lea.vmem %s1994_s0, %s1519_s26  ;;  %v1563_v33 = vld [vmem:[%s1998_s4 + $0x88] sm:$0xff]   ;;  %v1566_v35 = vld [vmem:[%s1998_s4 + $0x90] sm:$0xff]   ;;  %v1569_v38 = vld [vmem:[%s1998_s4 + $0x98] sm:$0xff]  }
  0x11   : > { %1485 = vmatprep.subr.bf16.mxu1 %v1639_v1  ;;  %v1557_v23 = vld [vmem:[%s327_s16 + $0x4] ss:$12 sps:$4 sm:$0xff]   ;;  %v1555_v26 = vld [vmem:[%s327_s16] ss:$12 sps:$4 sm:$0xff]   ;;  %v1558_v28 = vld [vmem:[%s327_s16 + $0x8] ss:$12 sps:$4 sm:$0xff]  }
  0x12   : > { %578 = vmatprep.mubr.bf16.mxu0 %v1557_v23  ;;  %v1567_v36 = vld [vmem:[%s1998_s4 + $0x10] sm:$0xff]   ;;  %v1570_v39 = vld [vmem:[%s1998_s4 + $0x18] sm:$0xff]   ;;  %v1571_v40 = vld [vmem:[%s1998_s4 + $0x60] sm:$0xff]  }
  0x13   : > { %1424 = vmatpush3.bf16.msra.mxu0 %v1541_v11  ;;  %v1572_v41 = vld [vmem:[%s1998_s4 + $0xa0] sm:$0xff]   ;;  %v1574_v43 = vld [vmem:[%s1998_s4 + $0x68] sm:$0xff]   ;;  %v1577_v46 = vld [vmem:[%s1998_s4 + $0x70] sm:$0xff]  }
  0x14   : > { %1486 = vmatpush3.bf16.msra.mxu1 %v1542_v12  ;;  %1425 = vmatprep.subr.bf16.mxu0 %v1543_v13  ;;  %v1573_v42 = vld [vmem:[%s1998_s4 + $0x20] sm:$0xff]   ;;  %v1575_v44 = vld [vmem:[%s1998_s4 + $0xa8] sm:$0xff]   ;;  %v1578_v47 = vld [vmem:[%s1998_s4 + $0xb0] sm:$0xff]  }
  0x15   : > { %1487 = vmatprep.subr.bf16.mxu1 %v1639_v1  ;;  %v1576_v45 = vld [vmem:[%s1998_s4 + $0x28] sm:$0xff]   ;;  %v1579_v48 = vld [vmem:[%s1998_s4 + $0x30] sm:$0xff]   ;;  %v1580_v49 = vld [vmem:[%s1998_s4 + $0x78] sm:$0xff]  }
  0x16   : > { %v1581_v50 = vld [vmem:[%s1998_s4 + $0xb8] sm:$0xff]   ;;  %v1585_v52 = vld [vmem:[%s2001_s7 + $0x4] ss:$16 sps:$4 sm:$0xff]   ;;  %v1354_v60 = vld [vmem:[%s1996_s2] ss:$0 sm:$0xff] }
  0x17   : > { %1426 = vmatpush3.bf16.msra.mxu0 %v1544_v14  ;;  %v1582_v51 = vld [vmem:[%s1998_s4 + $0x38] sm:$0xff]   ;;  %v1355_v2 = vld [vmem:[%s1997_s3] ss:$0 sm:$0xff]  ;;  %v1597_v23 = vld [vmem:[%s2001_s7 + $0x44] ss:$16 sps:$4 sm:$0xff]  }
  0x18   : > { %1488 = vmatpush3.bf16.msra.mxu1 %v1545_v15  ;;  %1427 = vmatprep.subr.bf16.mxu0 %v1546_v16  ;;  %v1588_v53 = vld [vmem:[%s2001_s7 + $0xc] ss:$16 sps:$4 sm:$0xff]   ;;  %v1583_v12 = vld [vmem:[%s2001_s7] ss:$16 sps:$4 sm:$0xff]   ;;  %v1586_v13 = vld [vmem:[%s2001_s7 + $0x8] ss:$16 sps:$4 sm:$0xff]  }
  0x19   : > { %1489 = vmatprep.subr.bf16.mxu1 %v1639_v1 }
  0x1b   : > { %1428 = vmatpush3.bf16.msra.mxu0 %v1547_v17 }
  0x1c   : > { %1490 = vmatpush3.bf16.msra.mxu1 %v1548_v18  ;;  %1429 = vmatprep.subr.bf16.mxu0 %v1549_v19  ;;  %v1591_v19 = vld [vmem:[%s2001_s7 + $0x24] ss:$16 sps:$4 sm:$0xff]  }
  0x1d   : > { %1491 = vmatprep.subr.bf16.mxu1 %v1639_v1 }
  0x1f   : > { %1430 = vmatpush3.bf16.msra.mxu0 %v1550_v20  ;;  %v1594_v20 = vld [vmem:[%s2001_s7 + $0x2c] ss:$16 sps:$4 sm:$0xff]  }
  0x20   : > { %1492 = vmatpush3.bf16.msra.mxu1 %v1551_v21  ;;  %1431 = vmatprep.subr.bf16.mxu0 %v1552_v22  ;;  %v1589_v21 = vld [vmem:[%s2001_s7 + $0x20] ss:$16 sps:$4 sm:$0xff]   ;;  %v1592_v22 = vld [vmem:[%s2001_s7 + $0x28] ss:$16 sps:$4 sm:$0xff]  }
  0x21   : > { %1493 = vmatprep.subr.bf16.mxu1 %v1639_v1 }
  0x23   : > { %1432 = vmatpush3.bf16.msra.mxu0 %v1553_v24  ;;  %v1600_v24 = vld [vmem:[%s2001_s7 + $0x4c] ss:$16 sps:$4 sm:$0xff]  }
  0x24   : > { %1494 = vmatpush3.bf16.msra.mxu1 %v1554_v25  ;;  %1448 = vmatprep.subr.bf16.mxu0 %v1559_v27  ;;  %v1595_v25 = vld [vmem:[%s2001_s7 + $0x40] ss:$16 sps:$4 sm:$0xff]   ;;  %v1603_v27 = vld [vmem:[%s2001_s7 + $0x64] ss:$16 sps:$4 sm:$0xff]  }
  0x25   : > { %1499 = vmatprep.subr.bf16.mxu1 %v1639_v1 }
  0x26   : > { %579 = vmatmul.mubr.bf16.vlgmr.msra.gmra.mrb[0].mxu0 %v1555_v26  ;;  %v1598_v26 = vld [vmem:[%s2001_s7 + $0x48] ss:$16 sps:$4 sm:$0xff]  }
  0x27   : > { %1496 = vmatmul.mubr.bf16.vlgmr.msra.gmra.mrb[0].mxu1 %v1558_v28  ;;  %1449 = vmatpush3.bf16.msra.mxu0 %v1561_v30  ;;  %v1606_v28 = vld [vmem:[%s2001_s7 + $0x6c] ss:$16 sps:$4 sm:$0xff]   ;;  %v1604_v30 = vld [vmem:[%s2001_s7 + $0x68] ss:$16 sps:$4 sm:$0xff]  }
  0x28   : > { %1500 = vmatpush3.bf16.msra.mxu1 %v1560_v29  ;;  %1450 = vmatprep.subr.bf16.mxu0 %v1562_v31  ;;  %v1601_v29 = vld [vmem:[%s2001_s7 + $0x60] ss:$16 sps:$4 sm:$0xff]   ;;  %v1609_v31 = vld [vmem:[%s2001_s7 + $0x84] ss:$16 sps:$4 sm:$0xff]  }
  0x29   : > { %1501 = vmatprep.subr.bf16.mxu1 %v1639_v1  ;;  %1515 = vmatprep.mubr.msk.bf16.mxu1 %vm1640_vm0, %v1639_v1 }
  0x2b   : > { %1451 = vmatpush3.bf16.msra.mxu0 %v1564_v32  ;;  %v1612_v32 = vld [vmem:[%s2001_s7 + $0x8c] ss:$16 sps:$4 sm:$0xff]  }
  0x2c   : > { %1502 = vmatpush3.bf16.msra.mxu1 %v1563_v33  ;;  %1452 = vmatprep.subr.bf16.mxu0 %v1565_v34  ;;  %v1607_v33 = vld [vmem:[%s2001_s7 + $0x80] ss:$16 sps:$4 sm:$0xff]   ;;  %v1610_v34 = vld [vmem:[%s2001_s7 + $0x88] ss:$16 sps:$4 sm:$0xff]  }
  0x2d   : > { %1503 = vmatprep.subr.bf16.mxu1 %v1639_v1 }
  0x2f   : > { %1453 = vmatpush3.bf16.msra.mxu0 %v1567_v36  ;;  %v1618_v36 = vld [vmem:[%s2001_s7 + $0xac] ss:$16 sps:$4 sm:$0xff]  }
  0x30   : > { %1504 = vmatpush3.bf16.msra.mxu1 %v1566_v35  ;;  %1454 = vmatprep.subr.bf16.mxu0 %v1568_v37  ;;  %v1615_v35 = vld [vmem:[%s2001_s7 + $0xa4] ss:$16 sps:$4 sm:$0xff]   ;;  %v1613_v37 = vld [vmem:[%s2001_s7 + $0xa0] ss:$16 sps:$4 sm:$0xff]  }
  0x31   : > { %1505 = vmatprep.subr.bf16.mxu1 %v1639_v1 }
  0x33   : > { %1455 = vmatpush3.bf16.msra.mxu0 %v1570_v39  ;;  %v1621_v39 = vld [vmem:[%s2001_s7 + $0xc4] ss:$16 sps:$4 sm:$0xff]  }
  0x34   : > { %1506 = vmatpush3.bf16.msra.mxu1 %v1569_v38  ;;  %1456 = vmatprep.subr.bf16.mxu0 %v1571_v40  ;;  %v1616_v38 = vld [vmem:[%s2001_s7 + $0xa8] ss:$16 sps:$4 sm:$0xff]   ;;  %v1624_v40 = vld [vmem:[%s2001_s7 + $0xcc] ss:$16 sps:$4 sm:$0xff]  }
  0x35   : > { %1507 = vmatprep.subr.bf16.mxu1 %v1639_v1 }
  0x37   : > { %1457 = vmatpush3.bf16.msra.mxu0 %v1573_v42  ;;  %v1622_v42 = vld [vmem:[%s2001_s7 + $0xc8] ss:$16 sps:$4 sm:$0xff]  }
  0x38   : > { %1508 = vmatpush3.bf16.msra.mxu1 %v1572_v41  ;;  %1458 = vmatprep.subr.bf16.mxu0 %v1574_v43  ;;  %v1619_v41 = vld [vmem:[%s2001_s7 + $0xc0] ss:$16 sps:$4 sm:$0xff]   ;;  %v1627_v43 = vld [vmem:[%s2001_s7 + $0xe4] ss:$16 sps:$4 sm:$0xff]  }
  0x39   : > { %1509 = vmatprep.subr.bf16.mxu1 %v1639_v1 }
  0x3b   : > { %1459 = vmatpush3.bf16.msra.mxu0 %v1576_v45  ;;  %v1625_v45 = vld [vmem:[%s2001_s7 + $0xe0] ss:$16 sps:$4 sm:$0xff]  }
  0x3c   : > { %1510 = vmatpush3.bf16.msra.mxu1 %v1575_v44  ;;  %1460 = vmatprep.subr.bf16.mxu0 %v1577_v46  ;;  %v1630_v44 = vld [vmem:[%s2001_s7 + $0xec] ss:$16 sps:$4 sm:$0xff]   ;;  %v1628_v46 = vld [vmem:[%s2001_s7 + $0xe8] ss:$16 sps:$4 sm:$0xff]  }
  0x3d   : > { %1511 = vmatprep.subr.bf16.mxu1 %v1639_v1 }
  0x3f   : > { %1461 = vmatpush3.bf16.msra.mxu0 %v1579_v48 }
  0x40   : > { %1512 = vmatpush3.bf16.msra.mxu1 %v1578_v47  ;;  %1462 = vmatprep.subr.bf16.mxu0 %v1580_v49  ;;  %v1641_v47 = vmov 0  }
  0x41   : > { %1513 = vmatprep.subr.bf16.mxu1 %v1639_v1 }
  0x43   : > { %1463 = vmatpush3.bf16.msra.mxu0 %v1582_v51 }
  0x44   : > { %1514 = vmatpush3.bf16.msra.mxu1 %v1581_v50  ;;  %1170 = vmatprep.subr.bf16.mxu0 %v1585_v52 }
  0x45   : > { %1213 = vmatprep.subr.bf16.mxu1 %v1588_v53 }
  0xf9   : > { %v1433_v54 = vpop.f32.mrb[0].mxu0 }
  0xfa   : > { %v621_v55 = vpop.f32.mrb[0].mxu1  ;;  %v1434_v56 = vpop.f32.mrb[1].mxu0 }
  0xfb   : > { %v1435_v57 = vadd.f32 %v1434_v56, %v1433_v54  ;;  %v1497_v58 = vpop.f32.mrb[1].mxu1  ;;  %v1436_v59 = vpop.f32.mrb[2].mxu0 }
  0xfc   : > { %v624_v61 = vpop.f32.mrb[2].mxu1  ;;  %v1437_v62 = vpop.f32.mrb[3].mxu0 }
  0xfd   : > { %v622_v63 = vadd.f32 %v1435_v57, %v621_v55  ;;  %v1438_v0 = vadd.f32 %v1437_v62, %v1436_v59  ;;  %v1498_v1 = vpop.f32.mrb[3].mxu1  ;;  %v1380_v55 = vld [vmem:[%s1999_s5] ss:$0 sm:$0xff] }
  0xff   : > { %v635_v3 = vmul.f32 %v1354_v60, %v622_v63  ;;  %v625_v4 = vadd.f32 %v1438_v0, %v624_v61 }
 0x101   : > { %v644_v5 = vadd.f32 %v1355_v2, %v635_v3  ;;  %v636_v6 = vmul.f32 %v1354_v60, %v625_v4  ;;  %v1381_v60 = vld [vmem:[%s2000_s6] ss:$0 sm:$0xff] }
 0x103   : > { %v646_v7 = vmax.f32 %v644_v5, 0.0  ;;  %v645_v8 = vadd.f32 %v1355_v2, %v636_v6  ;;  %v990_v5 = vlaneseq }
 0x105   : > { %650 = vst [vmem:[#allocation2 + $0x1] sm:$0xff] %v646_v7  ;;  %v647_v9 = vmax.f32 %v645_v8, 0.0  ;;  %v991_v6 = vshrl.u32 %v990_v5, 7 }
 0x107   : > { %651 = vst [vmem:[#allocation2 + $0x9] sm:$0xff] %v647_v9  ;;  %v659_v10 = vpack.c.bf16 %v647_v9, %v646_v7  ;;  %v992_v7 = vsub.s32 0, %v991_v6  ;;  %v1000_v8 = vsub.s32 2, %v991_v6  ;;  %v988_v9 = vld [vmem:[%s2002_s8] sm:$0xf] }
 0x109   : > { %885 = vmatprep.mubr.bf16.mxu0 %v659_v10  ;;  %v996_v10 = vsub.s32 1, %v991_v6 }
 0x10c   : > { %v652_v11 = vld [vmem:[#allocation2] sm:$0xff] }
 0x10e   : > { %v656_v14 = vld [vmem:[#allocation2 + $0x2] sm:$0xff]  ;;  %v657_v15 = vld [vmem:[#allocation2 + $0xa] sm:$0xff] }
 0x10f   : > { %v653_v16 = vld [vmem:[#allocation2 + $0x8] sm:$0xff]  ;;  %v660_v17 = vpack.c.bf16 %v657_v15, %v656_v14  ;;  %v997_v14 = vrot.slane %v988_v9, %v996_v10 }
 0x110   : > { %v658_v18 = vpack.c.bf16 %v653_v16, %v652_v11  ;;  %v1004_v11 = vsub.s32 3, %v991_v6 }
 0x111   : > { %1516 = vmatmul.mubr.bf16.vlgmr.msra.gmra.mrb[4].mxu1 %v660_v17 }
 0x112   : > { %886 = vmatmul.mubr.bf16.vlgmr.msra.gmra.mrb[4].mxu0 %v658_v18  ;;  %1214 = vmatpush1.bf16.msra.mxu1 %v1586_v13  ;;  %v1001_v13 = vrot.slane %v988_v9, %v1000_v8  ;;  %v1005_v15 = vrot.slane %v988_v9, %v1004_v11 }
 0x113   : > { %1171 = vmatpush1.bf16.msra.mxu0 %v1583_v12  ;;  %1215 = vmatprep.subr.bf16.mxu1 %v1594_v20  ;;  %v993_v12 = vrot.slane %v988_v9, %v992_v7 }
 0x114   : > { %1172 = vmatprep.subr.bf16.mxu0 %v1591_v19  ;;  %1202 = vmatprep.mubr.bf16.mxu0 %v1641_v47 }
 0x115   : > { %1245 = vmatprep.mubr.bf16.mxu1 %v1641_v47 }
 0x116   : > { %1216 = vmatpush1.bf16.msra.mxu1 %v1592_v22 }
 0x117   : > { %1173 = vmatpush1.bf16.msra.mxu0 %v1589_v21  ;;  %1217 = vmatprep.subr.bf16.mxu1 %v1600_v24 }
 0x118   : > { %1174 = vmatprep.subr.bf16.mxu0 %v1597_v23 }
 0x11a   : > { %1218 = vmatpush1.bf16.msra.mxu1 %v1598_v26 }
 0x11b   : > { %1175 = vmatpush1.bf16.msra.mxu0 %v1595_v25  ;;  %1219 = vmatprep.subr.bf16.mxu1 %v1606_v28 }
 0x11c   : > { %1176 = vmatprep.subr.bf16.mxu0 %v1603_v27 }
 0x11e   : > { %1220 = vmatpush1.bf16.msra.mxu1 %v1604_v30 }
 0x11f   : > { %1177 = vmatpush1.bf16.msra.mxu0 %v1601_v29  ;;  %1221 = vmatprep.subr.bf16.mxu1 %v1612_v32 }
 0x120   : > { %1178 = vmatprep.subr.bf16.mxu0 %v1609_v31 }
 0x122   : > { %1222 = vmatpush1.bf16.msra.mxu1 %v1610_v34 }
 0x123   : > { %1179 = vmatpush1.bf16.msra.mxu0 %v1607_v33  ;;  %1223 = vmatprep.subr.bf16.mxu1 %v1618_v36 }
 0x124   : > { %1180 = vmatprep.subr.bf16.mxu0 %v1615_v35 }
 0x126   : > { %1224 = vmatpush1.bf16.msra.mxu1 %v1616_v38 }
 0x127   : > { %1181 = vmatpush1.bf16.msra.mxu0 %v1613_v37  ;;  %1225 = vmatprep.subr.bf16.mxu1 %v1624_v40 }
 0x128   : > { %1182 = vmatprep.subr.bf16.mxu0 %v1621_v39 }
 0x12a   : > { %1226 = vmatpush1.bf16.msra.mxu1 %v1622_v42 }
 0x12b   : > { %1183 = vmatpush1.bf16.msra.mxu0 %v1619_v41  ;;  %1227 = vmatprep.subr.bf16.mxu1 %v1630_v44 }
 0x12c   : > { %1184 = vmatprep.subr.bf16.mxu0 %v1627_v43 }
 0x12e   : > { %1228 = vmatpush1.bf16.msra.mxu1 %v1628_v46 }
 0x12f   : > { %1185 = vmatpush1.bf16.msra.mxu0 %v1625_v45 }
 0x1e4   : > { %v928_v48 = vpop.f32.mrb[4].mxu1 }
 0x1e5   : > { %v1464_v49 = vpop.f32.mrb[4].mxu0  ;;  %v1517_v50 = vpop.f32.mrb[5].mxu1 }
 0x1e6   : > { %v1465_v51 = vpop.f32.mrb[5].mxu0  ;;  %v931_v53 = vpop.f32.mrb[6].mxu1 }
 0x1e7   : > { %v1466_v52 = vadd.f32 %v1465_v51, %v1464_v49  ;;  %v1467_v54 = vpop.f32.mrb[6].mxu0  ;;  %v1518_v56 = vpop.f32.mrb[7].mxu1 }
 0x1e8   : > { %v1468_v57 = vpop.f32.mrb[7].mxu0 }
 0x1e9   : > { %v929_v58 = vadd.f32 %v1466_v52, %v928_v48  ;;  %v1469_v59 = vadd.f32 %v1468_v57, %v1467_v54 }
 0x1eb   : > { %v942_v61 = vmul.f32 %v1380_v55, %v929_v58  ;;  %v932_v62 = vadd.f32 %v1469_v59, %v931_v53 }
 0x1ed   : > { %v951_v63 = vadd.f32 %v1381_v60, %v942_v61  ;;  %v943_v0 = vmul.f32 %v1380_v55, %v932_v62 }
 0x1ef   : > { %v952_v1 = vadd.f32 %v1381_v60, %v943_v0  ;;  %v953_v2 = vmax.f32 %v951_v63, 0.0 }
 0x1f1   : > { %v954_v3 = vmax.f32 %v952_v1, 0.0 }
 0x1f3   : > { %v955_v4 = vpack.c.bf16 %v954_v3, %v953_v2 }
 0x1f5   : > { %1203 = vmatmul.mubr.bf16.vlgmr.msra.gmra.mrb[8].mxu0 %v955_v4  ;;  %1246 = vmatmul.mubr.bf16.vlgmr.msra.gmra.mrb[8].mxu1 %v955_v4 }
 0x2c8   : > { %v1204_v16 = vpop.f32.mrb[8].mxu0  ;;  %v1247_v17 = vpop.f32.mrb[8].mxu1 }
 0x2c9   : > { %v1205_v18 = vadd.f32 %v1204_v16, %v993_v12  ;;  %v1248_v19 = vadd.f32 %v1247_v17, %v1001_v13  ;;  %v1206_v20 = vpop.f32.mrb[9].mxu0  ;;  %v1249_v21 = vpop.f32.mrb[9].mxu1 }
 0x2ca   : > { %v1207_v22 = vadd.f32 %v1206_v20, %v997_v14  ;;  %v1250_v23 = vadd.f32 %v1249_v21, %v1005_v15  ;;  %v1208_v24 = vpop.f32.mrb[10].mxu0  ;;  %v1251_v25 = vpop.f32.mrb[10].mxu1 }
 0x2cb   : > { %1256 = vst [vmem:[%s332_s17] sm:$0xff] %v1205_v18  ;;  %1258 = vst [vmem:[%s332_s17 + $0x10] sm:$0xff] %v1248_v19  ;;  %v1209_v26 = vadd.f32 %v1208_v24, %v993_v12  ;;  %v1252_v27 = vadd.f32 %v1251_v25, %v1001_v13  ;;  %v1210_v28 = vpop.f32.mrb[11].mxu0  ;;  %v1253_v29 = vpop.f32.mrb[11].mxu1 }
 0x2cc   : > { %1257 = vst [vmem:[%s332_s17 + $0x8] sm:$0xff] %v1207_v22  ;;  %1259 = vst [vmem:[%s332_s17 + $0x18] sm:$0xff] %v1250_v23  ;;  %v1211_v30 = vadd.f32 %v1210_v28, %v997_v14  ;;  %v1254_v31 = vadd.f32 %v1253_v29, %v1005_v15 }
 0x2cd   : > { %1260 = vst [vmem:[%s332_s17 + $0x20] sm:$0xff] %v1209_v26  ;;  %1262 = vst [vmem:[%s332_s17 + $0x30] sm:$0xff] %v1252_v27 }
 0x2ce   : > { %1261 = vst [vmem:[%s332_s17 + $0x28] sm:$0xff] %v1211_v30  ;;  %1263 = vst [vmem:[%s332_s17 + $0x38] sm:$0xff] %v1254_v31 }
 0x2cf PF: > { %s19_s30 = sadd.s32 1, %s1637_s30  }
 0x2d0   : > { %p16_p4 = scmp.ge.s32.totalorder %s19_s30, 4  }
 0x2d2   :  { %18 = sbr.rel (!%p16_p4) target bundleno = 1 (0x1), region = 86 }

</bundles_post_ra>
